<compile_context>
chip_gen: v5e
topology: v5e:2x2
jax: 0.10.0
libtpu: 0.0.40
codegen_flags: <defaults>
</compile_context>

<pallas_src>
import jax
import jax.numpy as jnp
from jax.experimental import pallas as pl
from jax.experimental.pallas import tpu as pltpu


def translation_embedding_kernel(s_ref, r_ref, o_ref,
                                 wr_ref, wo_ref, ws_ref, b_ref, out_ref):
    # out = relu(r @ W_r + o @ W_o + s @ W_s + b'), f32 accumulation on the MXU.
    acc = jnp.dot(r_ref[...], wr_ref[...], preferred_element_type=jnp.float32)
    acc = acc + jnp.dot(o_ref[...], wo_ref[...], preferred_element_type=jnp.float32)
    acc = acc + jnp.dot(s_ref[...], ws_ref[...], preferred_element_type=jnp.float32)
    out_ref[...] = jnp.maximum(acc + b_ref[...], 0.0).astype(out_ref.dtype)
    # TODO(synk): F.dropout(training=True) not implemented; kernel matches eval-mode semantics.


def _round_up(x, m):
    return ((x + m - 1) // m) * m


def _fuse_params(params, compute_dtype):
    """Fold linear_s / linear_o through the fc weight (exact algebra), done once in f32."""
    ws, bs, wo, bo, wfc, bfc = params
    H = ws.shape[0]
    wfc_r = wfc[:H, :].astype(jnp.float32)
    wfc_t = wfc[H:, :].astype(jnp.float32)
    w_r = wfc_r                                                     # (H, H)
    w_o = wo.astype(jnp.float32) @ wfc_t                            # (H, H)
    w_s = -(ws.astype(jnp.float32) @ wfc_t)                         # (H, H)
    b = (bo - bs).astype(jnp.float32) @ wfc_t + bfc.astype(jnp.float32)
    return (w_r.astype(compute_dtype),
            w_o.astype(compute_dtype),
            w_s.astype(compute_dtype),
            b.reshape(1, H).astype(jnp.float32))


def translation_embedding(s, r, o, params, *, block_b=None, vmem_limit_bytes=None):
    B, H = s.shape
    compute_dtype = s.dtype
    w_r, w_o, w_s, b_packed = _fuse_params(params, compute_dtype)

    # Batch blocking: aim for >=2 grid steps (pipelining + both v7x TensorCores),
    # with blocks sized toward the MXU M dimension when the batch allows it.
    if block_b is None:
        if B >= 512:
            block_b = 256
        elif B >= 256:
            block_b = 128
        elif B >= 16:
            block_b = _round_up(pl.cdiv(B, 2), 8)
        else:
            block_b = _round_up(max(B, 1), 8)

    # Remainder handling: zero-pad the batch, slice the result afterwards.
    B_pad = _round_up(B, block_b)
    if B_pad != B:
        pad = ((0, B_pad - B), (0, 0))
        s = jnp.pad(s, pad)
        r = jnp.pad(r, pad)
        o = jnp.pad(o, pad)

    feat_spec = pl.BlockSpec((block_b, H), lambda i: (i, 0))
    w_spec = pl.BlockSpec((H, H), lambda i: (0, 0))      # grid-invariant; kept resident
    b_spec = pl.BlockSpec((1, H), lambda i: (0, 0))

    out = pl.pallas_call(
        translation_embedding_kernel,
        out_shape=jax.ShapeDtypeStruct((B_pad, H), s.dtype),
        grid_spec=pl.GridSpec(
            grid=(B_pad // block_b,),
            in_specs=[feat_spec, feat_spec, feat_spec, w_spec, w_spec, w_spec, b_spec],
            out_specs=feat_spec,
        ),
        compiler_params=pltpu.CompilerParams(
            dimension_semantics=("parallel",),
            vmem_limit_bytes=vmem_limit_bytes,
        ),
    )(s, r, o, w_r, w_o, w_s, b_packed)

    return out[:B] if B_pad != B else out


def _reference(s, r, o, params):
    """Un-fused reference matching the PyTorch module (eval mode), f32."""
    ws, bs, wo, bo, wfc, bfc = params
    trans_s = s @ ws + bs
    trans_o = o @ wo + bo
    trans_r = trans_o - trans_s
    cat = jnp.concatenate([r, trans_r], axis=1)
    return jnp.maximum(cat @ wfc + bfc, 0.0)


if __name__ == "__main__":
    B = 16         # batch (2 grid steps of 8 rows -> exercises pipelining/megacore)
    H = 128        # nhidden (original module uses 512; scaled down)

    key = jax.random.PRNGKey(0)
    keys = jax.random.split(key, 9)

    # Deterministic synthetic parameters in (in_features, out_features) layout.
    scale = 1.0 / jnp.sqrt(H)
    ws = jax.random.normal(keys[0], (H, H), jnp.float32) * scale
    bs = jax.random.normal(keys[1], (H,), jnp.float32) * 0.01
    wo = jax.random.normal(keys[2], (H, H), jnp.float32) * scale
    bo = jax.random.normal(keys[3], (H,), jnp.float32) * 0.01
    wfc = jax.random.normal(keys[4], (2 * H, H), jnp.float32) * scale
    bfc = jax.random.normal(keys[5], (H,), jnp.float32) * 0.01
    params = (ws, bs, wo, bo, wfc, bfc)

    # Example inputs: s_feature, r_feature, o_feature, each (batch, nhidden).
    s_feature = jax.random.normal(keys[6], (B, H), jnp.float32)
    r_feature = jax.random.normal(keys[7], (B, H), jnp.float32)
    o_feature = jax.random.normal(keys[8], (B, H), jnp.float32)

    ref = _reference(s_feature, r_feature, o_feature, params)

    # f32 path (tolerance covers the exact-but-reassociated fused algebra).
    out = translation_embedding(s_feature, r_feature, o_feature, params)
    out = jax.block_until_ready(out)
    assert out.shape == (B, H)
    assert jnp.allclose(out, ref, atol=1e-3, rtol=1e-3)

    # bf16 fast path (native MXU input dtype; weights cast to bf16, f32 accumulation).
    out_bf16 = translation_embedding(
        s_feature.astype(jnp.bfloat16),
        r_feature.astype(jnp.bfloat16),
        o_feature.astype(jnp.bfloat16),
        params,
    )
    out_bf16 = jax.block_until_ready(out_bf16)
    assert out_bf16.dtype == jnp.bfloat16
    assert jnp.allclose(out_bf16.astype(jnp.float32), ref, atol=5e-2, rtol=5e-2)

    print("KERNEL_OK")
</pallas_src>

<mosaic_0001>
module attributes {stable_mosaic.version = 11 : i64} {
  func.func @translation_embedding_kernel(%arg0: i32, %arg1: memref<8x128xf32, #tpu.memory_space<vmem>>, %arg2: memref<8x128xf32, #tpu.memory_space<vmem>>, %arg3: memref<8x128xf32, #tpu.memory_space<vmem>>, %arg4: memref<128x128xf32, #tpu.memory_space<vmem>>, %arg5: memref<128x128xf32, #tpu.memory_space<vmem>>, %arg6: memref<128x128xf32, #tpu.memory_space<vmem>>, %arg7: memref<1x128xf32, #tpu.memory_space<vmem>>, %arg8: memref<8x128xf32, #tpu.memory_space<vmem>>) attributes {dimension_semantics = [#tpu.dimension_semantics<parallel>], iteration_bounds = array<i64: 2>, scalar_prefetch = 0 : i64, scratch_operands = 0 : i64, tpu.core_type = #tpu.core_type<tc>, window_params = [{transform_indices = @transform_0, window_bounds = array<i64: 8, 128>}, {transform_indices = @transform_1, window_bounds = array<i64: 8, 128>}, {transform_indices = @transform_2, window_bounds = array<i64: 8, 128>}, {pipeline_mode = #tpu.pipeline_mode<synchronous>, transform_indices = @transform_3, window_bounds = array<i64: 128, 128>}, {pipeline_mode = #tpu.pipeline_mode<synchronous>, transform_indices = @transform_4, window_bounds = array<i64: 128, 128>}, {pipeline_mode = #tpu.pipeline_mode<synchronous>, transform_indices = @transform_5, window_bounds = array<i64: 128, 128>}, {pipeline_mode = #tpu.pipeline_mode<synchronous>, transform_indices = @transform_6, window_bounds = array<i64: 1, 128>}, {transform_indices = @transform_7, window_bounds = array<i64: 8, 128>}]} {
    %c0 = arith.constant 0 : index
    %c0_0 = arith.constant 0 : index
    %0 = vector.load %arg2[%c0, %c0_0] : memref<8x128xf32, #tpu.memory_space<vmem>>, vector<8x128xf32>
    %c0_1 = arith.constant 0 : index
    %c0_2 = arith.constant 0 : index
    %1 = vector.load %arg4[%c0_1, %c0_2] : memref<128x128xf32, #tpu.memory_space<vmem>>, vector<128x128xf32>
    %cst = arith.constant dense<0.000000e+00> : vector<8x128xf32>
    %2 = tpu.matmul %0, %1, %cst {dimension_numbers = #tpu.dot_dimension_numbers<[1], [0], [0], [1], [0, 0, 1, 1], [], []>} : vector<8x128xf32>, vector<128x128xf32>, vector<8x128xf32> -> vector<8x128xf32>
    %c0_3 = arith.constant 0 : index
    %c0_4 = arith.constant 0 : index
    %3 = vector.load %arg3[%c0_3, %c0_4] : memref<8x128xf32, #tpu.memory_space<vmem>>, vector<8x128xf32>
    %c0_5 = arith.constant 0 : index
    %c0_6 = arith.constant 0 : index
    %4 = vector.load %arg5[%c0_5, %c0_6] : memref<128x128xf32, #tpu.memory_space<vmem>>, vector<128x128xf32>
    %cst_7 = arith.constant dense<0.000000e+00> : vector<8x128xf32>
    %5 = tpu.matmul %3, %4, %cst_7 {dimension_numbers = #tpu.dot_dimension_numbers<[1], [0], [0], [1], [0, 0, 1, 1], [], []>} : vector<8x128xf32>, vector<128x128xf32>, vector<8x128xf32> -> vector<8x128xf32>
    %6 = arith.addf %2, %5 : vector<8x128xf32>
    %c0_8 = arith.constant 0 : index
    %c0_9 = arith.constant 0 : index
    %7 = vector.load %arg1[%c0_8, %c0_9] : memref<8x128xf32, #tpu.memory_space<vmem>>, vector<8x128xf32>
    %c0_10 = arith.constant 0 : index
    %c0_11 = arith.constant 0 : index
    %8 = vector.load %arg6[%c0_10, %c0_11] : memref<128x128xf32, #tpu.memory_space<vmem>>, vector<128x128xf32>
    %cst_12 = arith.constant dense<0.000000e+00> : vector<8x128xf32>
    %9 = tpu.matmul %7, %8, %cst_12 {dimension_numbers = #tpu.dot_dimension_numbers<[1], [0], [0], [1], [0, 0, 1, 1], [], []>} : vector<8x128xf32>, vector<128x128xf32>, vector<8x128xf32> -> vector<8x128xf32>
    %10 = arith.addf %6, %9 : vector<8x128xf32>
    %c0_13 = arith.constant 0 : index
    %c0_14 = arith.constant 0 : index
    %11 = vector.load %arg7[%c0_13, %c0_14] : memref<1x128xf32, #tpu.memory_space<vmem>>, vector<1x128xf32>
    %12 = vector.broadcast %11 : vector<1x128xf32> to vector<8x128xf32>
    %13 = arith.addf %10, %12 : vector<8x128xf32>
    %cst_15 = arith.constant 0.000000e+00 : f32
    %14 = vector.broadcast %cst_15 : f32 to vector<8x128xf32>
    %15 = arith.maximumf %13, %14 : vector<8x128xf32>
    %c0_16 = arith.constant 0 : index
    %c0_17 = arith.constant 0 : index
    %16 = vector.load %arg8[%c0_16, %c0_17] : memref<8x128xf32, #tpu.memory_space<vmem>>, vector<8x128xf32>
    tpu.vector_store %arg8[%c0_16, %c0_17], %15 {strides = array<i32>} : memref<8x128xf32, #tpu.memory_space<vmem>>, vector<8x128xf32>,
    return
  }
  func.func @transform_0(%arg0: i32) -> (i32, i32) {
    %c0_i32 = arith.constant 0 : i32
    %c0_i32_0 = arith.constant 0 : i32
    return %arg0, %c0_i32 : i32, i32
  }
  func.func @transform_1(%arg0: i32) -> (i32, i32) {
    %c0_i32 = arith.constant 0 : i32
    %c0_i32_0 = arith.constant 0 : i32
    return %arg0, %c0_i32 : i32, i32
  }
  func.func @transform_2(%arg0: i32) -> (i32, i32) {
    %c0_i32 = arith.constant 0 : i32
    %c0_i32_0 = arith.constant 0 : i32
    return %arg0, %c0_i32 : i32, i32
  }
  func.func @transform_3(%arg0: i32) -> (i32, i32) {
    %c0_i32 = arith.constant 0 : i32
    %c0_i32_0 = arith.constant 0 : i32
    %c0_i32_1 = arith.constant 0 : i32
    return %c0_i32, %c0_i32_0 : i32, i32
  }
  func.func @transform_4(%arg0: i32) -> (i32, i32) {
    %c0_i32 = arith.constant 0 : i32
    %c0_i32_0 = arith.constant 0 : i32
    %c0_i32_1 = arith.constant 0 : i32
    return %c0_i32, %c0_i32_0 : i32, i32
  }
  func.func @transform_5(%arg0: i32) -> (i32, i32) {
    %c0_i32 = arith.constant 0 : i32
    %c0_i32_0 = arith.constant 0 : i32
    %c0_i32_1 = arith.constant 0 : i32
    return %c0_i32, %c0_i32_0 : i32, i32
  }
  func.func @transform_6(%arg0: i32) -> (i32, i32) {
    %c0_i32 = arith.constant 0 : i32
    %c0_i32_0 = arith.constant 0 : i32
    %c0_i32_1 = arith.constant 0 : i32
    return %c0_i32, %c0_i32_0 : i32, i32
  }
  func.func @transform_7(%arg0: i32) -> (i32, i32) {
    %c0_i32 = arith.constant 0 : i32
    %c0_i32_0 = arith.constant 0 : i32
    return %arg0, %c0_i32 : i32, i32
  }
}

</mosaic_0001>

<bundles_post_ra>
// kernel: tpu_custom_call.1
= control target key start
LH: loop header
LB: loop body
LE: loop exit
PB: predicated region body
PF: predicated region fallthrough
CT: control target
= control target key end

     0   :  { %s1352_s0 = inlined_call_operand.hbm [shape: f32[16,128], index: 0, kind: input, shape index: {}]   ;;  %s1353_s1 = inlined_call_operand.hbm [shape: f32[16,128], index: 1, kind: input, shape index: {}]   ;;  %s1354_s2 = inlined_call_operand.hbm [shape: f32[16,128], index: 2, kind: input, shape index: {}]   ;;  %s1355_s3 = inlined_call_operand.hbm [shape: f32[128,128], index: 3, kind: input, shape index: {}]   ;;  %s1356_s4 = inlined_call_operand.hbm [shape: f32[128,128], index: 4, kind: input, shape index: {}]   ;;  %s1357_s5 = inlined_call_operand.hbm [shape: f32[128,128], index: 5, kind: input, shape index: {}]   ;;  %s1358_s6 = inlined_call_operand.vmem [shape: f32[1,128], index: 6, kind: input, shape index: {}]   ;;  %s1359_s7 = inlined_call_operand.hbm [shape: f32[16,128], index: 7, kind: output, shape index: {}]  }
   0x1   :  { %1371 = sst [smem:[#allocation24_spill]] %s1353_s1 }
   0x2   :  { %1372 = sst [smem:[#allocation25_spill]] %s1355_s3 }
   0x3   :  { %12 = vsyncpa [#allocation3], 0 }
   0x4   :  { %14 = vsyncpa [#allocation3 + $0x1], 0 }
   0x5   :  { %15 = vsyncpa [#allocation6], 0 }
   0x6   :  { %17 = vsyncpa [#allocation6 + $0x1], 0 }
   0x7   :  { %18 = vsyncpa [#allocation9], 0 }
   0x8   :  { %19 = vsyncpa [#allocation12], 0 }
   0x9   :  { %20 = vsyncpa [#allocation4], 0 }
   0xa   :  { %22 = vsyncpa [#allocation4 + $0x1], 0  ;;  %s1117_s24 = smov 0   ;;  %s1119_s25 = smov 0  }
   0xb   :  { %s1121_s26 = smov 0   ;;  %s1123_s27 = smov 0  }
   0xc LB: > { %1373 = sst [smem:[#allocation19_spill]] %s1058_s24  ;;  %s1141_s8 = sadd.s32 4294967295, %s1070_s27   ;;  %s1070_s27 = sphi %s1123_s27, %s1397_s27   ;;  %s1066_s26 = sphi %s1121_s26, %s1401_s26   ;;  %s1062_s25 = sphi %s1119_s25, %s1400_s25   ;;  %s1058_s24 = sphi %s1117_s24, %s1399_s24  }
   0xd   : > { %1374 = sst [smem:[#allocation20_spill]] %s1070_s27  ;;  %p699_p0 = scmp.ge.s32.totalorder %s1070_s27, 1 }
   0xe   : > { %s1375_s3 = sld [smem:[#allocation25_spill]]  ;;  %p1370_p1 = scmp.eq.s32.totalorder %s1141_s8, 0 }
   0xf   : > { %p221_p2 = scmp.lt.s32.totalorder %s1070_s27, 3  ;;  %s1072_s10 = smov [#allocation8]  }
  0x10   : > { %s234_s11 = sshll.u32 %s1072_s10, 4  ;;  %s1360_s13 = smov 128   ;;  %s235_s11 = int_to_ptr.vmem [resolvable:$true] %s234_s11 }
  0x11   : > { %p1146_p3 = pnand %p699_p0, %p221_p2  ;;  %s1362_s14 = smov 8  }
  0x12   : > { %s698_s15 = sadd.s32 4294967294, %s1070_s27   ;;  %s1166_s16 = sadd.s32 1, %s1070_s27  }
  0x13   : > { %p742_p4 = pneg %p1146_p3  ;;  %1378 = sst [smem:[#allocation21_spill]] %s1166_s16 }
  0x14   : > { %s232_s30 = sshll.u32 %s1375_s3, 4  ;;  %s35_s17 = sadd.s32 1, %s1066_s26  ;;  %s233_s30 = int_to_ptr.hbm [resolvable:$true] %s232_s30 }
  0x15   : > { %p1155_p6 = pnand %p742_p4, %p1370_p1  ;;  %s32_s18 = ssub.s32 %s1070_s27, %s1166_s16 }
  0x16   : > { %p42_p7 = scmp.ne.s32.totalorder %s1066_s26, %s1062_s25  ;;  %p33_p8 = scmp.eq.s32.totalorder %s32_s18, 0 }
  0x17   : > { %745 = dma.hbm_to_vmem [thread:$0]  (!%p1155_p6), %s233_s30, 2048, %s235_s11, [#allocation9], %s1360_s13, %s1360_s13, %s1362_s14  }
  0x18   : > { %p43_p9 = scmp.eq.s32.totalorder %s1070_s27, 0  ;;  %p48_p10 = scmp.ne.s32.totalorder %s1062_s25, %s1058_s24 }
  0x19   : > { %p208_p11 = scmp.eq.s32.totalorder %s1141_s8, 1  ;;  %p214_p2 = scmp.eq.s32.totalorder %s698_s15, 1 }
  0x1a   : > { %s1178_s19 = scalar_select %p33_p8, %s1066_s26, %s35_s17  }
  0x1b   : > { %p44_p12 = por %p43_p9, %p42_p7  ;;  %p1182_p13 = por %p1370_p1, %p48_p10 }
  0x1c   : > { %1379 = sst [smem:[#allocation22_spill]] %s1178_s19  ;;  %p1186_p0 = por %p208_p11, %p42_p7 }
  0x1d   : > { %p769_p4 = scmp.lt.s32.totalorder %s1070_s27, 2  ;;  %s1364_s22 = sand.u32 1, %s1066_s26  }
  0x1e   : > { %p1192_p5 = por %p214_p2, %p48_p10  ;;  %s1198_s28 = sshll.u32 %s1364_s22, 3 }
  0x1f   : > { %s1201_s29 = sshll.u32 %s1070_s27, 3  ;;  %p1203_p8 = pnand %p769_p4, %p44_p12 }
  0x20   : > { %s1382_s23 = scalar_select %p1192_p5, 1, 0 }
  0x21   : > { %s298_s10 = sand.u32 1, %s1070_s27   ;;  %s1385_s1 = sld [smem:[#allocation24_spill]] }
  0x22   : > { %1383 = sst [smem:[#allocation23_spill]] %s1382_s23  ;;  %s302_s18 = scalar_lea.vmem [#allocation5], %s1198_s28 }
  0x23   : > { %s310_s13 = sshll.u32 %s302_s18, 4  ;;  %s246_s19 = sshll.u32 %s1356_s4, 4  ;;  %s311_s13 = int_to_ptr.vmem [resolvable:$true] %s310_s13  ;;  %s247_s19 = int_to_ptr.hbm [resolvable:$true] %s246_s19 }
  0x24   : > { %s1216_s16 = scalar_lea.sflag [#allocation6], %s298_s10  ;;  %p846_p9 = pneg %p1203_p8 }
  0x27   : > { %s306_s17 = scalar_lea.hbm %s1385_s1, %s1201_s29 }
  0x28   : > { %s308_s14 = sshll.u32 %s306_s17, 4  ;;  %s849_s17 = scalar_lea.hbm %s1385_s1, 16  ;;  %s309_s14 = int_to_ptr.hbm [resolvable:$true] %s308_s14 }
  0x29   : > { %s842_s23 = sshra.s32 %s309_s14, 4  ;;  %s843_s23 = int_to_ptr.hbm [resolvable:$true] %s842_s23 }
  0x2a   : > { %s844_s24 = scalar_lea.hbm %s843_s23, 8  ;;  %p850_p12 = scmp.lt.s32.totalorder %s843_s23, %s1385_s1 }
  0x2b   : > { %p845_p7 = scmp.ne.s32.totalorder %s843_s23, %s844_s24  ;;  %p851_p2 = scmp.lt.s32.totalorder %s849_s17, %s844_s24 }
  0x2d   : > { %p847_p10 = pnand %p846_p9, %p845_p7  ;;  %p852_p4 = por %p851_p2, %p850_p12 }
  0x2f   : > { %p848_p11 = pneg %p847_p10 }
  0x31   : > { %p853_p1 = pnand %p852_p4, %p848_p11 }
  0x33   : > { %856 = shalt.err (!%p853_p1)
}
  0x34   : > { %758 = dma.hbm_to_vmem [thread:$0]  (!%p1203_p8), %s309_s14, 128, %s311_s13, %s1216_s16  }
  0x35   : > { %s1075_s3 = smov [#allocation10]   ;;  %s260_s27 = sshll.u32 %s1357_s5, 4  ;;  %s261_s27 = int_to_ptr.hbm [resolvable:$true] %s260_s27 }
  0x36   : > { %s248_s22 = sshll.u32 %s1075_s3, 4  ;;  %s1386_s24 = smov 8   ;;  %s249_s22 = int_to_ptr.vmem [resolvable:$true] %s248_s22 }
  0x37   : > { %s1387_s23 = smov 128   ;;  %s1076_s15 = smov [#allocation11]  }
  0x38   : > { %748 = dma.hbm_to_vmem [thread:$0]  (!%p1155_p6), %s247_s19, 2048, %s249_s22, [#allocation9], %s1387_s23, %s1387_s23, %s1386_s24  }
  0x39   : > { %s262_s17 = sshll.u32 %s1076_s15, 4  ;;  %s287_s18 = scalar_lea.hbm %s1352_s0, %s1201_s29  ;;  %s263_s17 = int_to_ptr.vmem [resolvable:$true] %s262_s17 }
  0x3a   : > { %751 = dma.hbm_to_vmem [thread:$0]  (!%p1155_p6), %s261_s27, 2048, %s263_s17, [#allocation12], %s1387_s23, %s1387_s23, %s1386_s24  }
  0x3b   : > { %s289_s3 = sshll.u32 %s287_s18, 4  ;;  %s283_s10 = scalar_lea.vmem [#allocation2], %s1198_s28  ;;  %s290_s3 = int_to_ptr.hbm [resolvable:$true] %s289_s3 }
  0x3c   : > { %s291_s11 = sshll.u32 %s283_s10, 4  ;;  %s1388_s1 = sand.u32 1, %s1066_s26   ;;  %s292_s11 = int_to_ptr.vmem [resolvable:$true] %s291_s11 }
  0x3d   : > { %s280_s19 = scalar_lea.sflag [#allocation3], %s1388_s1  ;;  %s932_s22 = sshra.s32 %s290_s3, 4  ;;  %s933_s22 = int_to_ptr.hbm [resolvable:$true] %s932_s22 }
  0x3e   : > { %s934_s15 = scalar_lea.hbm %s933_s22, 8  ;;  %s939_s14 = scalar_lea.hbm %s1352_s0, 16 }
  0x3f   : > { %p935_p1 = scmp.ne.s32.totalorder %s933_s22, %s934_s15  ;;  %p940_p6 = scmp.lt.s32.totalorder %s933_s22, %s1352_s0 }
  0x40   : > { %p941_p11 = scmp.lt.s32.totalorder %s939_s14, %s934_s15 }
  0x41   : > { %p937_p7 = pnand %p935_p1, %p846_p9 }
  0x42   : > { %p942_p12 = por %p941_p11, %p940_p6 }
  0x43   : > { %p938_p10 = pneg %p937_p7 }
  0x45   : > { %p943_p2 = pnand %p942_p12, %p938_p10 }
  0x47   : > { %946 = shalt.err (!%p943_p2)
}
  0x48   : > { %755 = dma.hbm_to_vmem [thread:$0]  (!%p1203_p8), %s290_s3, 128, %s292_s11, %s280_s19  }
  0x49   : > { %s325_s17 = scalar_lea.hbm %s1354_s2, %s1201_s29  ;;  %s321_s10 = scalar_lea.vmem [#allocation7], %s1198_s28 }
  0x4a   : > { %s327_s18 = sshll.u32 %s325_s17, 4  ;;  %s329_s12 = sshll.u32 %s321_s10, 4  ;;  %s328_s18 = int_to_ptr.hbm [resolvable:$true] %s327_s18  ;;  %s330_s12 = int_to_ptr.vmem [resolvable:$true] %s329_s12 }
  0x4b   : > { %s962_s22 = sshra.s32 %s328_s18, 4  ;;  %s969_s3 = scalar_lea.hbm %s1354_s2, 16  ;;  %s963_s22 = int_to_ptr.hbm [resolvable:$true] %s962_s22 }
  0x4c   : > { %s964_s15 = scalar_lea.hbm %s963_s22, 8  ;;  %p970_p10 = scmp.lt.s32.totalorder %s963_s22, %s1354_s2 }
  0x4d   : > { %p965_p4 = scmp.ne.s32.totalorder %s963_s22, %s964_s15  ;;  %p971_p6 = scmp.lt.s32.totalorder %s969_s3, %s964_s15 }
  0x4f   : > { %p967_p1 = pnand %p965_p4, %p846_p9  ;;  %p972_p11 = por %p971_p6, %p970_p10 }
  0x51   : > { %p968_p7 = pneg %p967_p1 }
  0x53   : > { %p973_p12 = pnand %p972_p11, %p968_p7 }
  0x55   : > { %976 = shalt.err (!%p973_p12)
}
  0x56   : > { %761 = dma.hbm_to_vmem [thread:$0]  (!%p1203_p8), %s328_s18, 128, %s330_s12, %s1216_s16  }
  0x57   : > { %338 = sbr.rel (%p1146_p3) target bundleno = 275 (0x113), region = 48  ;;  %s1283_s28 = sand.u32 (!%p1146_p3), 1, %s1062_s25  }
  0x58   : > { %s1286_s29 = sshll.u32 (!%p1146_p3), %s1283_s28, 3  ;;  %s341_s27 = scalar_lea.sflag (!%p1146_p3), [#allocation3], %s1283_s28 }
  0x59   : > { %s344_s24 = scalar_lea.vmem (!%p1146_p3), [#allocation2], %s1286_s29 }
  0x5c   : > { %1037 = dma.done.wait (%p1182_p13), %s341_s27, 128  }
  0x5d   : > { %1039 = vsyncadd (%p1182_p13), %s341_s27, 4294967168  ;;  %s350_s9 = sand.u32 1, %s1141_s8   ;;  %s354_s30 = scalar_lea.vmem [#allocation5], %s1286_s29 }
  0x5e   : > { %s351_s16 = scalar_lea.sflag [#allocation6], %s350_s9 }
  0x5f   : > { %1041 = dma.done.wait (%p1182_p13), %s351_s16, 256  }
  0x60   : > { %1043 = vsyncadd (%p1182_p13), %s351_s16, 4294967040  ;;  %s364_s1 = scalar_lea.vmem [#allocation7], %s1286_s29  ;;  %p1389_p3 = scmp.eq.s32.totalorder %s1141_s8, 0 }
  0x62   : > { %1045 = dma.done.wait (%p1389_p3), [#allocation9], 4096   ;;  %p1390_p8 = pmov %p1389_p3 }
  0x63   : > { %p1391_p9 = pmov %p1389_p3 }
  0x64   : > { %1047 = vsyncadd (%p1390_p8), [#allocation9], 4294963200 }
  0x65   : > { %1049 = dma.done.wait (%p1391_p9), [#allocation12], 2048   ;;  %p1392_p2 = pmov %p1389_p3 }
  0x66   : > { %v511_v0 = vld [vmem:[#allocation11 + $0x78] sm:$0xff]  ;;  %v510_v1 = vld [vmem:[#allocation11 + $0x70] sm:$0xff]  ;;  %v509_v5 = vld [vmem:[#allocation11 + $0x68] sm:$0xff]  ;;  %s719_s20 = sshll.u32 %s1141_s8, 3  ;;  %s420_s22 = scalar_lea.vmem [#allocation13], %s1286_s29 }
  0x67   : > { %1051 = vsyncadd (%p1392_p2), [#allocation12], 4294965248  ;;  %v454_v2 = vld [vmem:[#allocation10 + $0x78] sm:$0xff]  ;;  %512 = vmatpush.msra.mxu2 %v511_v0  ;;  %v453_v4 = vld [vmem:[#allocation10 + $0x70] sm:$0xff]  ;;  %s551_s12 = scalar_lea.hbm %s1359_s7, %s719_s20  ;;  %s553_s15 = sshll.u32 %s420_s22, 4  ;;  %s554_s15 = int_to_ptr.vmem [resolvable:$true] %s553_s15 }
  0x68   : > { %455 = vmatpush.msra.mxu0 %v454_v2  ;;  %v437_v3 = vld [vmem:[#allocation8 + $0x78] sm:$0xff]  ;;  %v436_v6 = vld [vmem:[#allocation8 + $0x70] sm:$0xff]  ;;  %v452_v7 = vld [vmem:[#allocation10 + $0x68] sm:$0xff]  ;;  %s555_s13 = sshll.u32 %s551_s12, 4  ;;  %s541_s8 = scalar_lea.sflag [#allocation4], %s1283_s28  ;;  %s556_s13 = int_to_ptr.hbm [resolvable:$true] %s555_s13 }
  0x69   : > { %475 = vmatpush.msra.mxu1 %v437_v3  ;;  %513 = vmatpush.msra.mxu2 %v510_v1  ;;  %v435_v8 = vld [vmem:[#allocation8 + $0x68] sm:$0xff]  ;;  %v508_v9 = vld [vmem:[#allocation11 + $0x60] sm:$0xff]  ;;  %v507_v12 = vld [vmem:[#allocation11 + $0x58] sm:$0xff]  ;;  %s1006_s14 = sshra.s32 %s556_s13, 4  ;;  %s1012_s27 = scalar_lea.hbm %s1359_s7, 16  ;;  %s1007_s14 = int_to_ptr.hbm [resolvable:$true] %s1006_s14 }
  0x6a   : > { %456 = vmatpush.msra.mxu0 %v453_v4  ;;  %v451_v10 = vld [vmem:[#allocation10 + $0x60] sm:$0xff]  ;;  %v450_v13 = vld [vmem:[#allocation10 + $0x58] sm:$0xff]  ;;  %v506_v15 = vld [vmem:[#allocation11 + $0x50] sm:$0xff]  ;;  %s1008_s3 = scalar_lea.hbm %s1007_s14, 8  ;;  %p1013_p7 = scmp.lt.s32.totalorder %s1007_s14, %s1359_s7 }
  0x6b   : > { %476 = vmatpush.msra.mxu1 %v436_v6  ;;  %514 = vmatpush.msra.mxu2 %v509_v5  ;;  %v434_v11 = vld [vmem:[#allocation8 + $0x60] sm:$0xff]  ;;  %v433_v14 = vld [vmem:[#allocation8 + $0x58] sm:$0xff]  ;;  %v449_v16 = vld [vmem:[#allocation10 + $0x50] sm:$0xff]  ;;  %p1009_p13 = scmp.ne.s32.totalorder %s1007_s14, %s1008_s3  ;;  %p1014_p10 = scmp.lt.s32.totalorder %s1012_s27, %s1008_s3 }
  0x6c   : > { %457 = vmatpush.msra.mxu0 %v452_v7  ;;  %v432_v17 = vld [vmem:[#allocation8 + $0x50] sm:$0xff]  ;;  %v505_v18 = vld [vmem:[#allocation11 + $0x48] sm:$0xff]  ;;  %v504_v21 = vld [vmem:[#allocation11 + $0x40] sm:$0xff] }
  0x6d   : > { %477 = vmatpush.msra.mxu1 %v435_v8  ;;  %515 = vmatpush.msra.mxu2 %v508_v9  ;;  %v448_v19 = vld [vmem:[#allocation10 + $0x48] sm:$0xff]  ;;  %v447_v22 = vld [vmem:[#allocation10 + $0x40] sm:$0xff]  ;;  %v503_v24 = vld [vmem:[#allocation11 + $0x38] sm:$0xff]  ;;  %p1010_p4 = pnand %p1009_p13, %p1186_p0  ;;  %p1015_p6 = por %p1014_p10, %p1013_p7 }
  0x6e   : > { %458 = vmatpush.msra.mxu0 %v451_v10  ;;  %v431_v20 = vld [vmem:[#allocation8 + $0x48] sm:$0xff]  ;;  %v430_v23 = vld [vmem:[#allocation8 + $0x40] sm:$0xff]  ;;  %v446_v25 = vld [vmem:[#allocation10 + $0x38] sm:$0xff] }
  0x6f   : > { %478 = vmatpush.msra.mxu1 %v434_v11  ;;  %516 = vmatpush.msra.mxu2 %v507_v12  ;;  %v429_v26 = vld [vmem:[#allocation8 + $0x38] sm:$0xff]  ;;  %v502_v27 = vld [vmem:[#allocation11 + $0x30] sm:$0xff]  ;;  %v501_v30 = vld [vmem:[#allocation11 + $0x28] sm:$0xff]  ;;  %p1011_p1 = pneg %p1010_p4 }
  0x70   : > { %459 = vmatpush.msra.mxu0 %v450_v13  ;;  %v445_v28 = vld [vmem:[#allocation10 + $0x30] sm:$0xff]  ;;  %v444_v31 = vld [vmem:[#allocation10 + $0x28] sm:$0xff]  ;;  %v500_v33 = vld [vmem:[#allocation11 + $0x20] sm:$0xff] }
  0x71   : > { %479 = vmatpush.msra.mxu1 %v433_v14  ;;  %517 = vmatpush.msra.mxu2 %v506_v15  ;;  %v428_v29 = vld [vmem:[#allocation8 + $0x30] sm:$0xff]  ;;  %v427_v32 = vld [vmem:[#allocation8 + $0x28] sm:$0xff]  ;;  %v443_v34 = vld [vmem:[#allocation10 + $0x20] sm:$0xff]  ;;  %p1016_p11 = pnand %p1015_p6, %p1011_p1 }
  0x72   : > { %460 = vmatpush.msra.mxu0 %v449_v16  ;;  %v426_v35 = vld [vmem:[#allocation8 + $0x20] sm:$0xff]  ;;  %v499_v36 = vld [vmem:[#allocation11 + $0x18] sm:$0xff]  ;;  %v498_v39 = vld [vmem:[#allocation11 + $0x10] sm:$0xff] }
  0x73   : > { %480 = vmatpush.msra.mxu1 %v432_v17  ;;  %518 = vmatpush.msra.mxu2 %v505_v18  ;;  %v442_v37 = vld [vmem:[#allocation10 + $0x18] sm:$0xff]  ;;  %v441_v40 = vld [vmem:[#allocation10 + $0x10] sm:$0xff]  ;;  %v497_v42 = vld [vmem:[#allocation11 + $0x8] sm:$0xff] }
  0x74   : > { %461 = vmatpush.msra.mxu0 %v448_v19  ;;  %v425_v38 = vld [vmem:[#allocation8 + $0x18] sm:$0xff]  ;;  %v424_v41 = vld [vmem:[#allocation8 + $0x10] sm:$0xff]  ;;  %v440_v43 = vld [vmem:[#allocation10 + $0x8] sm:$0xff] }
  0x75   : > { %481 = vmatpush.msra.mxu1 %v431_v20  ;;  %519 = vmatpush.msra.mxu2 %v504_v21  ;;  %v423_v44 = vld [vmem:[#allocation8 + $0x8] sm:$0xff]  ;;  %v496_v45 = vld [vmem:[#allocation11] sm:$0xff]  ;;  %v495_v47 = vld [vmem:[%s344_s24] sm:$0xff] }
  0x76   : > { %462 = vmatpush.msra.mxu0 %v447_v22  ;;  %v439_v46 = vld [vmem:[#allocation10] sm:$0xff]  ;;  %v438_v49 = vld [vmem:[%s364_s1] sm:$0xff] }
  0x77   : > { %482 = vmatpush.msra.mxu1 %v430_v23  ;;  %520 = vmatpush.msra.mxu2 %v503_v24  ;;  %v422_v48 = vld [vmem:[#allocation8] sm:$0xff]  ;;  %v811_v54 = vld [vmem:[%s1358_s6] ss:$0 sm:$0xff] }
  0x78   : > { %463 = vmatpush.msra.mxu0 %v446_v25  ;;  %v421_v50 = vld [vmem:[%s354_s30] sm:$0xff] }
  0x79   : > { %483 = vmatpush.msra.mxu1 %v429_v26  ;;  %521 = vmatpush.msra.mxu2 %v502_v27 }
  0x7a   : > { %464 = vmatpush.msra.mxu0 %v445_v28 }
  0x7b   : > { %484 = vmatpush.msra.mxu1 %v428_v29  ;;  %522 = vmatpush.msra.mxu2 %v501_v30 }
  0x7c   : > { %465 = vmatpush.msra.mxu0 %v444_v31 }
  0x7d   : > { %485 = vmatpush.msra.mxu1 %v427_v32  ;;  %523 = vmatpush.msra.mxu2 %v500_v33 }
  0x7e   : > { %466 = vmatpush.msra.mxu0 %v443_v34 }
  0x7f   : > { %486 = vmatpush.msra.mxu1 %v426_v35  ;;  %524 = vmatpush.msra.mxu2 %v499_v36 }
  0x80   : > { %467 = vmatpush.msra.mxu0 %v442_v37 }
  0x81   : > { %487 = vmatpush.msra.mxu1 %v425_v38  ;;  %525 = vmatpush.msra.mxu2 %v498_v39 }
  0x82   : > { %468 = vmatpush.msra.mxu0 %v441_v40 }
  0x83   : > { %488 = vmatpush.msra.mxu1 %v424_v41  ;;  %526 = vmatpush.msra.mxu2 %v497_v42 }
  0x84   : > { %469 = vmatpush.msra.mxu0 %v440_v43 }
  0x85   : > { %489 = vmatpush.msra.mxu1 %v423_v44  ;;  %527 = vmatpush.msra.mxu2 %v496_v45 }
  0x86   : > { %470 = vmatpush.msra.mxu0 %v439_v46  ;;  %528 = vmatmul.f32.vlgmr.msra.gmra.mxu2 %v495_v47 }
  0x87   : > { %490 = vmatpush.msra.mxu1 %v422_v48  ;;  %471 = vmatmul.f32.vlgmr.msra.gmra.mxu0 %v438_v49 }
  0x88   : > { %491 = vmatmul.f32.vlgmr.msra.gmra.mxu1 %v421_v50 }
 0x104   : > { %v472_v51 = vpop.f32.mrf.mxu0 }
 0x105   : > { %v492_v52 = vpop.f32.mrf.mxu1 }
 0x106   : > { %v493_v53 = vadd.f32 %v492_v52, %v472_v51 }
 0x109   : > { %v529_v55 = vpop.f32.mrf.mxu2 }
 0x10a   : > { %v532_v56 = vadd.f32 %v529_v55, %v493_v53 }
 0x10c   : > { %v537_v57 = vadd.f32 %v811_v54, %v532_v56 }
 0x10e   : > { %v538_v58 = vmax.f32 %v537_v57, 0.0 }
 0x110   : > { %539 = vst [vmem:[%s420_s22] sm:$0xff] %v538_v58 }
 0x111   : > { %1019 = shalt.err (!%p1016_p11)
}
 0x112   : > { %740 = dma.vmem_to_hbm [thread:$0]  (%p1186_p0), %s554_s15, 128, %s556_s13, %s541_s8  }
 0x113 PF: > { %s1393_s28 = sld [smem:[#allocation19_spill]] }
 0x114   : > { %s1395_s16 = sld [smem:[#allocation20_spill]] }
 0x119   : > { %s567_s30 = sand.u32 1, %s1393_s28  }
 0x11a   : > { %p1396_p12 = scmp.ge.s32.totalorder %s1395_s16, 2  ;;  %s568_s1 = scalar_lea.sflag [#allocation4], %s567_s30 }
 0x11c   : > { %p763_p3 = pnand %p1396_p12, %p1192_p5 }
 0x11e   : > { %p764_p8 = pneg %p763_p3 }
 0x120   : > { %1053 = dma.done.wait (%p764_p8), %s568_s1, 128  }
 0x121   : > { %1055 = vsyncadd (%p764_p8), %s568_s1, 4294967168  ;;  %s1397_s27 = sld [smem:[#allocation21_spill]]  ;;  %s1399_s24 = smov %s1062_s25 }
 0x122   : > { %s1398_s20 = sld [smem:[#allocation22_spill]]  ;;  %s1400_s25 = smov %s1066_s26 }
 0x127   : > { %p25_p9 = scmp.ge.s32.totalorder %s1397_s27, 4  }
 0x128   : > { %s1401_s26 = smov %s1398_s20 }
 0x129   :  { %27 = sbr.rel (!%p25_p9) target bundleno = 12 (0xc), region = 129 }
 0x12e   :  { %574 = vsyncpa [#allocation3], 1 }
 0x12f   :  { %576 = vsyncpa [#allocation3 + $0x1], 1 }
 0x130   :  { %577 = vsyncpa [#allocation6], 1 }
 0x131   :  { %579 = vsyncpa [#allocation6 + $0x1], 1 }
 0x132   :  { %580 = vsyncpa [#allocation9], 1 }
 0x133   :  { %581 = vsyncpa [#allocation12], 1 }
 0x134   :  { %582 = vsyncpa [#allocation4], 1 }
 0x135   :  { %584 = vsyncpa [#allocation4 + $0x1], 1 }

</bundles_post_ra>
